<compile_context>
chip_gen: v7x
topology: tpu7x:2x2x1
jax: 0.10.0
libtpu: 0.0.40
codegen_flags: <defaults>
</compile_context>

<pallas_src>
import math
import functools

import numpy as np
import jax
import jax.numpy as jnp
from jax.experimental import pallas as pl
from jax.experimental.pallas import tpu as pltpu


def total_basis_count(ode_nums: int, basis_order: int) -> int:
    return math.factorial(ode_nums + basis_order) // (
        math.factorial(ode_nums) * math.factorial(basis_order)
    )


def _round_up(x: int, m: int) -> int:
    return ((x + m - 1) // m) * m


def _selection_matrices(ode_nums, basis_order, tb, tb_pad, ode_ext_pad):
    """Constant selection matrices S1, S2, S3 of shape (tb_pad, ode_ext_pad).

    x_ext row 0 is the constant 1, row i+1 is x_i. Monomial r is
    x_ext[a_r] * x_ext[b_r] * x_ext[c_r]; S* are one-hot over (a, b, c).
    Padding rows stay all-zero -> those Theta rows are exactly 0.
    """
    s1 = np.zeros((tb_pad, ode_ext_pad), np.float32)
    s2 = np.zeros((tb_pad, ode_ext_pad), np.float32)
    s3 = np.zeros((tb_pad, ode_ext_pad), np.float32)

    row = 0

    def set_row(r, a, b, c):
        s1[r, a] = 1.0
        s2[r, b] = 1.0
        s3[r, c] = 1.0

    set_row(row, 0, 0, 0)  # constant term: 1*1*1
    row += 1
    for ii in range(ode_nums):  # linear terms
        set_row(row, ii + 1, 0, 0)
        row += 1
    if basis_order >= 2:  # quadratic i<=j
        for ii in range(ode_nums):
            for jj in range(ii, ode_nums):
                set_row(row, ii + 1, jj + 1, 0)
                row += 1
    if basis_order >= 3:  # cubic i<=j<=k
        for ii in range(ode_nums):
            for jj in range(ii, ode_nums):
                for kk in range(jj, ode_nums):
                    set_row(row, ii + 1, jj + 1, kk + 1)
                    row += 1
    assert row == tb
    return s1, s2, s3


def _odenet_kernel(xe_ref, s1_ref, s2_ref, s3_ref, vct_ref, out_ref):
    """out^T = vc^T_pad @ ((S1 @ x_ext) * (S2 @ x_ext) * (S3 @ x_ext))."""
    xe = xe_ref[...]  # (ode_ext_pad, batch_tile), lane-dense
    f1 = jnp.dot(s1_ref[...], xe, preferred_element_type=jnp.float32)
    f2 = jnp.dot(s2_ref[...], xe, preferred_element_type=jnp.float32)
    f3 = jnp.dot(s3_ref[...], xe, preferred_element_type=jnp.float32)
    theta_t = f1 * f2 * f3  # (tb_pad, batch_tile)
    out_ref[...] = jnp.dot(
        vct_ref[...], theta_t, preferred_element_type=jnp.float32
    ).astype(out_ref.dtype)


def odenet_forward(x_input, vc, *, ode_nums: int, basis_order: int):
    """x_input: (batch, 1, ode_nums) or (batch, ode_nums); vc: (total_basis, ode_nums)."""
    tb = total_basis_count(ode_nums, basis_order)
    assert vc.shape == (tb, ode_nums)

    squeeze_mid = x_input.ndim == 3
    batch = x_input.shape[0]
    x2d = x_input.reshape(batch, ode_nums).astype(jnp.float32)

    # Padded dimensions (f32 tiling: sublane multiple of 8, lane multiple of 128).
    tb_pad = _round_up(tb, 8)               # 20 -> 24 for Lorenz
    ode_pad = _round_up(ode_nums, 8)        # 3  -> 8
    ode_ext_pad = _round_up(ode_nums + 1, 8)  # 4 -> 8 (constant-1 row + x rows)

    # Batch tile: lane-dense, >=128, capped at 512 (well under VMEM on v7x's
    # 64 MiB / 32 MiB scoped budget: ~(8+24+8)*512*4B*2buf per step is tiny).
    batch_tile = min(512, _round_up(max(batch, 1), 128))
    batch_pad = _round_up(max(batch, 1), batch_tile)
    n_tiles = batch_pad // batch_tile

    # Host-side constant operands.
    s1_np, s2_np, s3_np = _selection_matrices(
        ode_nums, basis_order, tb, tb_pad, ode_ext_pad
    )
    s1 = jnp.asarray(s1_np)
    s2 = jnp.asarray(s2_np)
    s3 = jnp.asarray(s3_np)

    # x_ext: (ode_ext_pad, batch_pad); row0 = 1, rows 1..ode_nums = x_i, rest 0.
    xe = jnp.zeros((ode_ext_pad, batch_pad), jnp.float32)
    xe = xe.at[0, :].set(1.0)
    xe = xe.at[1 : 1 + ode_nums, :batch].set(x2d.T)

    # vc^T zero-padded: (ode_pad, tb_pad).
    vct = jnp.zeros((ode_pad, tb_pad), jnp.float32)
    vct = vct.at[:ode_nums, :tb].set(vc.astype(jnp.float32).T)

    out_t = pl.pallas_call(
        _odenet_kernel,
        grid=(n_tiles,),
        in_specs=[
            pl.BlockSpec((ode_ext_pad, batch_tile), lambda i: (0, i)),  # x_ext tile
            pl.BlockSpec((tb_pad, ode_ext_pad), lambda i: (0, 0)),      # S1 (resident)
            pl.BlockSpec((tb_pad, ode_ext_pad), lambda i: (0, 0)),      # S2 (resident)
            pl.BlockSpec((tb_pad, ode_ext_pad), lambda i: (0, 0)),      # S3 (resident)
            pl.BlockSpec((ode_pad, tb_pad), lambda i: (0, 0)),          # vc^T (resident)
        ],
        out_specs=pl.BlockSpec((ode_pad, batch_tile), lambda i: (0, i)),
        out_shape=jax.ShapeDtypeStruct((ode_pad, batch_pad), jnp.float32),
        compiler_params=pltpu.CompilerParams(
            dimension_semantics=("parallel",),
        ),
    )(xe, s1, s2, s3, vct)

    out2d = out_t[:ode_nums, :batch].T  # (batch, ode_nums)
    if squeeze_mid:
        return out2d.reshape(batch, 1, ode_nums)
    return out2d


def _reference_forward(x_input, vc, *, ode_nums: int, basis_order: int):
    """Pure-numpy reference mirroring the PyTorch _compute_theta3d path."""
    x = np.asarray(x_input).reshape(x_input.shape[0], ode_nums)
    cols = [np.ones((x.shape[0], 1), np.float32)]
    for ii in range(ode_nums):
        cols.append(x[:, ii : ii + 1])
    if basis_order >= 2:
        for ii in range(ode_nums):
            for jj in range(ii, ode_nums):
                cols.append(x[:, ii : ii + 1] * x[:, jj : jj + 1])
    if basis_order >= 3:
        for ii in range(ode_nums):
            for jj in range(ii, ode_nums):
                for kk in range(jj, ode_nums):
                    cols.append(
                        x[:, ii : ii + 1] * x[:, jj : jj + 1] * x[:, kk : kk + 1]
                    )
    theta = np.concatenate(cols, axis=-1).astype(np.float32)
    out = theta @ np.asarray(vc, np.float32)
    return out.reshape(x_input.shape[0], 1, ode_nums)


if __name__ == "__main__":
    # Lorenz system: 3 state variables, cubic polynomial library.
    ode_nums = 3
    basis_order = 3
    batch = 8
    tb = total_basis_count(ode_nums, basis_order)  # = 20

    key = jax.random.PRNGKey(0)
    k_vc, k_x = jax.random.split(key)

    # self.vc.data.uniform_(-2, 2)  -> deterministic uniform(-2, 2)
    vc = jax.random.uniform(k_vc, (tb, ode_nums), jnp.float32, minval=-2.0, maxval=2.0)
    # x_input: (batch, 1, ode_nums)
    x_input = jax.random.normal(k_x, (batch, 1, ode_nums), jnp.float32)

    out = odenet_forward(x_input, vc, ode_nums=ode_nums, basis_order=basis_order)
    out = jax.block_until_ready(out)

    ref = _reference_forward(x_input, vc, ode_nums=ode_nums, basis_order=basis_order)
    assert out.shape == (batch, 1, ode_nums)
    assert np.allclose(np.asarray(out), ref, rtol=1e-5, atol=1e-5)

    print("KERNEL_OK")
</pallas_src>

<mosaic_0001>
module attributes {stable_mosaic.version = 11 : i64} {
  func.func @_odenet_kernel(%arg0: i32, %arg1: memref<8x128xf32, #tpu.memory_space<vmem>>, %arg2: memref<24x8xf32, #tpu.memory_space<vmem>>, %arg3: memref<24x8xf32, #tpu.memory_space<vmem>>, %arg4: memref<24x8xf32, #tpu.memory_space<vmem>>, %arg5: memref<8x24xf32, #tpu.memory_space<vmem>>, %arg6: memref<8x128xf32, #tpu.memory_space<vmem>>) attributes {dimension_semantics = [#tpu.dimension_semantics<parallel>], iteration_bounds = array<i64: 1>, scalar_prefetch = 0 : i64, scratch_operands = 0 : i64, tpu.core_type = #tpu.core_type<tc>, window_params = [{transform_indices = @transform_0, window_bounds = array<i64: 8, 128>}, {pipeline_mode = #tpu.pipeline_mode<synchronous>, transform_indices = @transform_1, window_bounds = array<i64: 24, 8>}, {pipeline_mode = #tpu.pipeline_mode<synchronous>, transform_indices = @transform_2, window_bounds = array<i64: 24, 8>}, {pipeline_mode = #tpu.pipeline_mode<synchronous>, transform_indices = @transform_3, window_bounds = array<i64: 24, 8>}, {pipeline_mode = #tpu.pipeline_mode<synchronous>, transform_indices = @transform_4, window_bounds = array<i64: 8, 24>}, {transform_indices = @transform_5, window_bounds = array<i64: 8, 128>}]} {
    %c0 = arith.constant 0 : index
    %c0_0 = arith.constant 0 : index
    %0 = vector.load %arg1[%c0, %c0_0] : memref<8x128xf32, #tpu.memory_space<vmem>>, vector<8x128xf32>
    %c0_1 = arith.constant 0 : index
    %c0_2 = arith.constant 0 : index
    %1 = vector.load %arg2[%c0_1, %c0_2] : memref<24x8xf32, #tpu.memory_space<vmem>>, vector<24x8xf32>
    %cst = arith.constant dense<0.000000e+00> : vector<24x128xf32>
    %2 = tpu.matmul %1, %0, %cst {dimension_numbers = #tpu.dot_dimension_numbers<[1], [0], [0], [1], [0, 0, 1, 1], [], []>} : vector<24x8xf32>, vector<8x128xf32>, vector<24x128xf32> -> vector<24x128xf32>
    %c0_3 = arith.constant 0 : index
    %c0_4 = arith.constant 0 : index
    %3 = vector.load %arg3[%c0_3, %c0_4] : memref<24x8xf32, #tpu.memory_space<vmem>>, vector<24x8xf32>
    %cst_5 = arith.constant dense<0.000000e+00> : vector<24x128xf32>
    %4 = tpu.matmul %3, %0, %cst_5 {dimension_numbers = #tpu.dot_dimension_numbers<[1], [0], [0], [1], [0, 0, 1, 1], [], []>} : vector<24x8xf32>, vector<8x128xf32>, vector<24x128xf32> -> vector<24x128xf32>
    %c0_6 = arith.constant 0 : index
    %c0_7 = arith.constant 0 : index
    %5 = vector.load %arg4[%c0_6, %c0_7] : memref<24x8xf32, #tpu.memory_space<vmem>>, vector<24x8xf32>
    %cst_8 = arith.constant dense<0.000000e+00> : vector<24x128xf32>
    %6 = tpu.matmul %5, %0, %cst_8 {dimension_numbers = #tpu.dot_dimension_numbers<[1], [0], [0], [1], [0, 0, 1, 1], [], []>} : vector<24x8xf32>, vector<8x128xf32>, vector<24x128xf32> -> vector<24x128xf32>
    %7 = arith.mulf %2, %4 : vector<24x128xf32>
    %8 = arith.mulf %7, %6 : vector<24x128xf32>
    %c0_9 = arith.constant 0 : index
    %c0_10 = arith.constant 0 : index
    %9 = vector.load %arg5[%c0_9, %c0_10] : memref<8x24xf32, #tpu.memory_space<vmem>>, vector<8x24xf32>
    %cst_11 = arith.constant dense<0.000000e+00> : vector<8x128xf32>
    %10 = tpu.matmul %9, %8, %cst_11 {dimension_numbers = #tpu.dot_dimension_numbers<[1], [0], [0], [1], [0, 0, 1, 1], [], []>} : vector<8x24xf32>, vector<24x128xf32>, vector<8x128xf32> -> vector<8x128xf32>
    %c0_12 = arith.constant 0 : index
    %c0_13 = arith.constant 0 : index
    %11 = vector.load %arg6[%c0_12, %c0_13] : memref<8x128xf32, #tpu.memory_space<vmem>>, vector<8x128xf32>
    tpu.vector_store %arg6[%c0_12, %c0_13], %10 {strides = array<i32>} : memref<8x128xf32, #tpu.memory_space<vmem>>, vector<8x128xf32>,
    return
  }
  func.func @transform_0(%arg0: i32) -> (i32, i32) {
    %c0_i32 = arith.constant 0 : i32
    %c0_i32_0 = arith.constant 0 : i32
    return %c0_i32, %arg0 : i32, i32
  }
  func.func @transform_1(%arg0: i32) -> (i32, i32) {
    %c0_i32 = arith.constant 0 : i32
    %c0_i32_0 = arith.constant 0 : i32
    %c0_i32_1 = arith.constant 0 : i32
    return %c0_i32, %c0_i32_0 : i32, i32
  }
  func.func @transform_2(%arg0: i32) -> (i32, i32) {
    %c0_i32 = arith.constant 0 : i32
    %c0_i32_0 = arith.constant 0 : i32
    %c0_i32_1 = arith.constant 0 : i32
    return %c0_i32, %c0_i32_0 : i32, i32
  }
  func.func @transform_3(%arg0: i32) -> (i32, i32) {
    %c0_i32 = arith.constant 0 : i32
    %c0_i32_0 = arith.constant 0 : i32
    %c0_i32_1 = arith.constant 0 : i32
    return %c0_i32, %c0_i32_0 : i32, i32
  }
  func.func @transform_4(%arg0: i32) -> (i32, i32) {
    %c0_i32 = arith.constant 0 : i32
    %c0_i32_0 = arith.constant 0 : i32
    %c0_i32_1 = arith.constant 0 : i32
    return %c0_i32, %c0_i32_0 : i32, i32
  }
  func.func @transform_5(%arg0: i32) -> (i32, i32) {
    %c0_i32 = arith.constant 0 : i32
    %c0_i32_0 = arith.constant 0 : i32
    return %c0_i32, %arg0 : i32, i32
  }
}

</mosaic_0001>

<bundles_post_ra>
// kernel: tpu_custom_call.1
= control target key start
LH: loop header
LB: loop body
LE: loop exit
PB: predicated region body
PF: predicated region fallthrough
CT: control target
= control target key end

     0   :  { %v496_v1 = vmov 0.0   ;;  %vm25_vm0 = vcmask 64512   ;;  %vm497_vm1 = vmmov 0   ;;  %s609_s0 = inlined_call_operand.vmem [shape: f32[8,128], index: 0, kind: input, shape index: {}]   ;;  %s610_s1 = inlined_call_operand.vmem [shape: f32[24,8], index: 1, kind: input, shape index: {}]   ;;  %s611_s2 = inlined_call_operand.vmem [shape: f32[24,8], index: 2, kind: input, shape index: {}]   ;;  %s612_s3 = inlined_call_operand.vmem [shape: f32[24,8], index: 3, kind: input, shape index: {}]   ;;  %s613_s4 = inlined_call_operand.vmem [shape: f32[8,24], index: 4, kind: input, shape index: {}]   ;;  %s614_s5 = inlined_call_operand.hbm [shape: f32[8,128], index: 5, kind: output, shape index: {}]  }
   0x1   :  { %v21_v0 = vld [vmem:[%s609_s0] sm:$0xff]  ;;  %421 = vmatprep.subr.mxu0 %v496_v1  ;;  %466 = vmatprep.subr.mxu1 %v496_v1  ;;  %v24_v3 = vld [vmem:[%s610_s1 + $0x10] sm:$0xff] }
   0x2   :  { %v22_v2 = vld [vmem:[%s610_s1] sm:$0xff]  ;;  %422 = vmatpush3.msra.mxu0 %v21_v0  ;;  %467 = vmatpush3.msra.mxu1 %v21_v0 }
   0x3   :  { %423 = vmatprep.mubr.msk.f32.mxu0 %vm497_vm1, %v496_v1  ;;  %429 = vmatprep.mubr.msk.f32.mxu1 %vm497_vm1, %v496_v1 }
   0x4   :  { %10 = vsyncpa [#allocation3], 0  ;;  %424 = vmatmul.mubr.msk.f32.vlgmr.msra.gmra.mrb[0].mxu0 %vm25_vm0, %v22_v2  ;;  %430 = vmatmul.mubr.msk.f32.vlgmr.msra.gmra.mrb[0].mxu1 %vm25_vm0, %v24_v3  ;;  %v23_v4 = vld [vmem:[%s610_s1 + $0x8] sm:$0xff]  ;;  %v115_v5 = vld [vmem:[%s611_s2] sm:$0xff]  ;;  %v498_v11 = vmov 0.0|0.0   ;;  %vm306_vm2 = vcmask 195584  }
   0x5   :  { %432 = vmatprep.subr.mxu1 %v496_v1  ;;  %426 = vmatprep.mubr.msk.f32.mxu0 %vm497_vm1, %v496_v1  ;;  %v116_v6 = vld [vmem:[%s611_s2 + $0x8] sm:$0xff]  ;;  %v207_v7 = vld [vmem:[%s612_s3] sm:$0xff]  ;;  %v117_v8 = vld [vmem:[%s611_s2 + $0x10] sm:$0xff]  ;;  %s499_s11 = smov [#allocation2]  }
   0x6   :  { %433 = vmatpush3.msra.mxu1 %v21_v0  ;;  %434 = vmatprep.mubr.msk.f32.mxu1 %vm497_vm1, %v496_v1  ;;  %v208_v9 = vld [vmem:[%s612_s3 + $0x8] sm:$0xff]  ;;  %v209_v10 = vld [vmem:[%s612_s3 + $0x10] sm:$0xff]  ;;  %v305_v37 = vld [vmem:[%s613_s4] sm:$0xff]  ;;  %s387_s12 = sshll.u32 %s499_s11, 4  ;;  %s388_s12 = int_to_ptr.vmem [resolvable:$true] %s387_s12 }
   0x7   :  { %443 = vmatprep.subr.mxu0 %v496_v1  ;;  %463 = vmatprep.subr.bf16.mxu1 %v498_v11  ;;  %s472_s13 = scalar_lea.vmem %s388_s12, 128  ;;  %p477_p1 = scmp.lt.s32.totalorder %s388_s12, %s388_s12 }
   0x8   :  { %427 = vmatmul.mubr.msk.f32.gmra.mrb[2].mxu0 %vm25_vm0, %v23_v4  ;;  %435 = vmatmul.mubr.msk.f32.vlgmr.msra.gmra.mrb[2].mxu1 %vm25_vm0, %v115_v5  ;;  %p473_p0 = scmp.ne.s32.totalorder %s388_s12, %s472_s13  ;;  %p478_p2 = scmp.lt.s32.totalorder %s472_s13, %s472_s13 }
   0x9   :  { %437 = vmatprep.mubr.msk.f32.mxu1 %vm497_vm1, %v496_v1  ;;  %444 = vmatpush3.msra.mxu0 %v21_v0 }
   0xa   :  { %445 = vmatprep.mubr.msk.f32.mxu0 %vm497_vm1, %v496_v1  ;;  %p479_p3 = por %p478_p2, %p477_p1 }
   0xc   :  { %438 = vmatmul.mubr.msk.f32.gmra.mrb[4].mxu1 %vm25_vm0, %v116_v6  ;;  %446 = vmatmul.mubr.msk.f32.vlgmr.msra.gmra.mrb[4].mxu0 %vm25_vm0, %v207_v7  ;;  %p480_p4 = pnand %p479_p3, %p473_p0 }
   0xd   :  { %440 = vmatprep.mubr.msk.f32.mxu1 %vm497_vm1, %v496_v1  ;;  %448 = vmatprep.mubr.msk.f32.mxu0 %vm497_vm1, %v496_v1 }
  0x10   :  { %441 = vmatmul.mubr.msk.f32.gmra.mrb[6].mxu1 %vm25_vm0, %v117_v8  ;;  %449 = vmatmul.mubr.msk.f32.gmra.mrb[6].mxu0 %vm25_vm0, %v208_v9 }
  0x11   :  { %451 = vmatprep.mubr.msk.f32.mxu0 %vm497_vm1, %v496_v1  ;;  %460 = vmatprep.mubr.msk.f32.mxu1 %vm497_vm1, %v496_v1 }
  0x14   :  { %452 = vmatmul.mubr.msk.f32.gmra.mrb[8].mxu0 %vm25_vm0, %v209_v10 }
  0xd7   :  { %v101_v12 = vpop.f32.mrb[0].mxu0  ;;  %v111_v13 = vpop.f32.mrb[0].mxu1 }
  0xd8   :  { %v425_v14 = vpop.f32.mrb[1].mxu0  ;;  %v431_v15 = vpop.f32.mrb[1].mxu1 }
  0xdb   :  { %v106_v16 = vpop.f32.mrb[2].mxu0  ;;  %v193_v17 = vpop.f32.mrb[2].mxu1 }
  0xdc   :  { %v299_v18 = vmul.f32 %v193_v17, %v101_v12  ;;  %v428_v19 = vpop.f32.mrb[3].mxu0  ;;  %v436_v20 = vpop.f32.mrb[3].mxu1 }
  0xdf   :  { %v198_v21 = vpop.f32.mrb[4].mxu1  ;;  %v285_v22 = vpop.f32.mrb[4].mxu0 }
  0xe0   :  { %v300_v23 = vmul.f32 %v198_v21, %v106_v16  ;;  %v302_v24 = vmul.f32 %v299_v18, %v285_v22  ;;  %v447_v25 = vpop.f32.mrb[5].mxu0  ;;  %v439_v26 = vpop.f32.mrb[5].mxu1 }
  0xe3   :  { %v203_v27 = vpop.f32.mrb[6].mxu1  ;;  %v290_v28 = vpop.f32.mrb[6].mxu0 }
  0xe4   :  { %v301_v29 = vmul.f32 %v203_v27, %v111_v13  ;;  %v303_v30 = vmul.f32 %v300_v23, %v290_v28  ;;  %v450_v31 = vpop.f32.mrb[7].mxu0  ;;  %v442_v32 = vpop.f32.mrb[7].mxu1 }
  0xe6   :  { %v464_v33 = vpack.c.bf16 %v303_v30, %v302_v24 }
  0xe7   :  { %v295_v34 = vpop.f32.mrb[8].mxu0 }
  0xe8   :  { %v304_v35 = vmul.f32 %v301_v29, %v295_v34  ;;  %465 = vmatpush3.bf16.msra.mxu1 %v464_v33  ;;  %v453_v36 = vpop.f32.mrb[9].mxu0 }
  0xe9   :  { %458 = vmatprep.subr.mxu1 %v496_v1 }
  0xec   :  { %459 = vmatpush3.msra.mxu1 %v304_v35 }
  0xed   :  { %461 = vmatmul.mubr.msk.f32.vlgmr.msra.gmra.mrb[8].mxu1 %vm306_vm2, %v305_v37 }
 0x1c0   :  { %v376_v38 = vpop.f32.mrb[8].mxu1 }
 0x1c1   :  { %380 = vst [vmem:[#allocation2] sm:$0xff] %v376_v38  ;;  %v462_v39 = vpop.f32.mrb[9].mxu1 }
 0x1c2   :  { %483 = shalt.err (!%p480_p4)
}
 0x1c3   :  { %s484_s4 = scalar_lea.hbm %s614_s5, 128 }
 0x1c4   :  { %p485_p5 = scmp.ne.s32.totalorder %s614_s5, %s484_s4  ;;  %p488_p6 = scmp.lt.u32.totalorder %s484_s4, %s614_s5 }
 0x1c6   :  { %p490_p7 = pnand %p488_p6, %p485_p5 }
 0x1c8   :  { %493 = shalt.err (!%p490_p7)
}
 0x1c9   :  { %390 = dma.vmem_to_hbm [thread:$0]  %s388_s12, 128, %s614_s5, [#allocation3]  }
 0x1ca   :  { %494 = dma.done.wait [#allocation3], 128  }
 0x1cb   :  { %495 = vsyncadd [#allocation3], 4294967168 }
 0x1cc   :  { %394 = vsyncpa [#allocation3], 1 }

</bundles_post_ra>
